<compile_context>
chip_gen: v5e
topology: v5e:2x2
jax: 0.10.0
libtpu: 0.0.40
codegen_flags: <defaults>
</compile_context>

<pallas_src>
import functools

import jax
import jax.numpy as jnp
from jax.experimental import pallas as pl
from jax.experimental.pallas import tpu as pltpu

_LANE = 128
_SUBLANE = 8
_BLOCK_BYTES_TARGET = 8 * 1024 * 1024  # ~8 MiB of logits per block


def _vmem_capacity_bytes():
    """Physical per-TensorCore VMEM; conservative fallback if query fails."""
    try:
        return int(pltpu.get_tpu_info().vmem_capacity_bytes)
    except Exception:
        return 64 * 1024 * 1024  # v7x per-TC size — safe on every generation


def _shifted_and_lse(logits_ref):
    """Numerically-stable shifted logits + per-row logsumexp (no full logp)."""
    logits = logits_ref[...].astype(jnp.float32)                  # (TB, C)
    m = jnp.max(logits, axis=-1, keepdims=True)                   # (TB, 1)
    shifted = logits - m                                          # (TB, C)
    lse = jnp.log(jnp.sum(jnp.exp(shifted), axis=-1, keepdims=True))  # (TB, 1)
    return shifted, lse


def _mask_rows(per_sample, rows_per_tile, num_valid):
    i = pl.program_id(0)
    rows = i * rows_per_tile + jax.lax.broadcasted_iota(
        jnp.int32, per_sample.shape, 0)
    return jnp.where(rows < num_valid, per_sample, 0.0)


def _write_tile_sum(out_ref, per_sample):
    """Store the tile partial sum at [0, 0] of the (8, 128) output block."""
    tile_sum = jnp.sum(per_sample, keepdims=True)                 # (1, 1)
    row = jax.lax.broadcasted_iota(jnp.int32, out_ref.shape, 0)
    col = jax.lax.broadcasted_iota(jnp.int32, out_ref.shape, 1)
    out_ref[...] = jnp.where((row == 0) & (col == 0), tile_sum,
                             0.0).astype(out_ref.dtype)


def _ce_int_kernel(logits_ref, targets_ref, out_ref, *,
                   num_classes, smoothing, rows_per_tile, num_valid, masked):
    """Per-tile CE partial sum for integer targets (smoothed or plain one-hot)."""
    shifted, lse = _shifted_and_lse(logits_ref)                   # (TB,C),(TB,1)

    class_ids = jax.lax.broadcasted_iota(jnp.int32, (1, num_classes), 1)
    tgt = targets_ref[...]                                        # (TB, 1) int32
    # shifted at the target class, per row (gather via compare + lane sum).
    shifted_tgt = jnp.sum(jnp.where(class_ids == tgt, shifted, 0.0),
                          axis=-1, keepdims=True)                 # (TB, 1)
    logp_tgt = shifted_tgt - lse                                  # (TB, 1)

    if smoothing > 0.0 and num_classes > 1:
        off = smoothing / (num_classes - 1.0)
        sum_logp = (jnp.sum(shifted, axis=-1, keepdims=True)
                    - jnp.float32(num_classes) * lse)             # (TB, 1)
        per_sample = -(off * sum_logp + (1.0 - smoothing - off) * logp_tgt)
    else:
        per_sample = -logp_tgt                                    # (TB, 1)

    if masked:
        per_sample = _mask_rows(per_sample, rows_per_tile, num_valid)
    _write_tile_sum(out_ref, per_sample)


def _ce_mixup_kernel(logits_ref, ta_ref, tb_ref, lam_ref, out_ref, *,
                     num_classes, rows_per_tile, num_valid, masked):
    """Per-tile CE partial sum for mixup targets, built in-kernel from ints.

    Note: matches the reference -- the mixup path ignores label smoothing.
    """
    shifted, lse = _shifted_and_lse(logits_ref)                   # (TB,C),(TB,1)

    class_ids = jax.lax.broadcasted_iota(jnp.int32, (1, num_classes), 1)
    tgt_a = ta_ref[...]                                           # (TB, 1) int32
    tgt_b = tb_ref[...]                                           # (TB, 1) int32
    lam = lam_ref[...].astype(jnp.float32)                        # (TB, 1)

    # Fused mixup weights -> single cross-lane reduction (1 XLU pass, not 2).
    weight = (jnp.where(class_ids == tgt_a, lam, 0.0)
              + jnp.where(class_ids == tgt_b, 1.0 - lam, 0.0))    # (TB, C)
    # -(lam*logp_a + (1-lam)*logp_b) == lse - sum(weight * shifted)
    per_sample = lse - jnp.sum(weight * shifted, axis=-1, keepdims=True)

    if masked:
        per_sample = _mask_rows(per_sample, rows_per_tile, num_valid)
    _write_tile_sum(out_ref, per_sample)


class CrossEntropyLoss:
    """Pallas-TPU equivalent of the PyTorch CrossEntropyLoss module."""

    def __init__(self, flooding, smoothing, num_classes, max_block_rows=None):
        self.flooding = float(flooding)
        self.smoothing = float(smoothing)
        self.num_classes = int(num_classes)
        # Optional override for the batch tile (testing / manual tuning).
        self.max_block_rows = max_block_rows

    def _plan(self, n, c, side_cols, itemsize):
        """Pick (tb, num_tiles, masked, vmem_limit_bytes) from the VMEM budget."""
        cap = _vmem_capacity_bytes()
        vmem_limit = int(cap * 0.75)            # headroom for compiler scratch
        tile_budget = int(vmem_limit * 0.8)

        # Per-row working set:
        #   2x double-buffered input stream (dtype-aware logits + lane-padded
        #   (TB,1) side columns at ~512 B/row each) + ~3 block-sized f32
        #   in-kernel temporaries (shifted, exp, compare/select result).
        stream_row = itemsize * c + 512 * side_cols
        temp_row = 3 * 4 * c
        per_row = 2 * stream_row + temp_row

        tb = max(1, tile_budget // per_row)
        # Block-byte target instead of a hard row clamp: keep the logits block
        # around a few MiB so per-grid-step overhead is negligible.
        tb = min(tb, max(1, _BLOCK_BYTES_TARGET // max(1, itemsize * c)))
        if self.max_block_rows is not None:
            tb = min(tb, int(self.max_block_rows))

        if tb >= n:
            # Whole batch in one block: block_shape == array dims is always
            # legal (no (8,128) divisibility requirement, no masking needed).
            return n, 1, False, vmem_limit

        tb = max(_SUBLANE, (tb // _SUBLANE) * _SUBLANE)
        num_tiles = pl.cdiv(n, tb)
        masked = (n % tb) != 0   # partial edge block -> mask garbage rows
        return tb, num_tiles, masked, vmem_limit

    def __call__(self, outputs, targets, lamda=None, indices=None):
        n, c = outputs.shape
        assert c == self.num_classes
        targets = targets.astype(jnp.int32)

        side_cols = 3 if lamda is not None else 1
        itemsize = jnp.dtype(outputs.dtype).itemsize
        tb, num_tiles, masked, vmem_limit = self._plan(n, c, side_cols, itemsize)

        out_shape = jax.ShapeDtypeStruct((_SUBLANE, num_tiles * _LANE),
                                         jnp.float32)
        out_spec = pl.BlockSpec((_SUBLANE, _LANE), lambda i: (0, i))
        logits_spec = pl.BlockSpec((tb, c), lambda i: (i, 0))
        col_spec = pl.BlockSpec((tb, 1), lambda i: (i, 0))
        cparams = pltpu.CompilerParams(
            dimension_semantics=("parallel",),
            vmem_limit_bytes=vmem_limit,
        )

        if lamda is not None:
            tgt_a = targets.reshape(n, 1)
            tgt_b = targets[indices].astype(jnp.int32).reshape(n, 1)
            lam = lamda.astype(jnp.float32).reshape(n, 1)
            kern = functools.partial(
                _ce_mixup_kernel, num_classes=self.num_classes,
                rows_per_tile=tb, num_valid=n, masked=masked)
            partials = pl.pallas_call(
                kern,
                out_shape=out_shape,
                grid=(num_tiles,),
                in_specs=[logits_spec, col_spec, col_spec, col_spec],
                out_specs=out_spec,
                compiler_params=cparams,
            )(outputs, tgt_a, tgt_b, lam)
        else:
            tgt = targets.reshape(n, 1)
            kern = functools.partial(
                _ce_int_kernel, num_classes=self.num_classes,
                smoothing=self.smoothing, rows_per_tile=tb, num_valid=n,
                masked=masked)
            partials = pl.pallas_call(
                kern,
                out_shape=out_shape,
                grid=(num_tiles,),
                in_specs=[logits_spec, col_spec],
                out_specs=out_spec,
                compiler_params=cparams,
            )(outputs, tgt)

        # Finalize (tiny) in plain JAX: each (8, 128) output block holds its
        # tile partial sum at element [0, 0] and zeros elsewhere, so a plain
        # dense sum reduces it (no strided gather).
        total = jnp.sum(partials)
        loss = total / jnp.float32(n)
        if self.flooding > 0:
            loss = jnp.abs(loss - self.flooding) + self.flooding
        return loss


def _reference_loss(outputs, targets, flooding, smoothing, num_classes,
                    lamda=None, indices=None):
    logp = jax.nn.log_softmax(outputs.astype(jnp.float32), axis=-1)
    if lamda is not None:
        ta = jax.nn.one_hot(targets, num_classes, dtype=jnp.float32)
        tb = jax.nn.one_hot(targets[indices], num_classes, dtype=jnp.float32)
        lam = lamda.reshape(-1, 1)
        rew = lam * ta + (1.0 - lam) * tb
    elif smoothing > 0:
        rew = jnp.full_like(logp, smoothing / (num_classes - 1.0))
        rew = rew.at[jnp.arange(outputs.shape[0]), targets].set(1.0 - smoothing)
    else:
        rew = jax.nn.one_hot(targets, num_classes, dtype=jnp.float32)
    loss = -1.0 * jnp.mean(jnp.sum(logp * rew, axis=1))
    if flooding > 0:
        loss = jnp.abs(loss - flooding) + flooding
    return loss


if __name__ == "__main__":
    key = jax.random.PRNGKey(0)
    k1, k2, k3, k4 = jax.random.split(key, 4)

    batch, num_classes = 8, 32
    flooding, smoothing = 0.02, 0.1

    outputs = jax.random.normal(k1, (batch, num_classes), dtype=jnp.float32)
    targets = jax.random.randint(k2, (batch,), 0, num_classes, dtype=jnp.int32)

    loss_fn = CrossEntropyLoss(flooding, smoothing, num_classes)

    # --- label-smoothing path ---
    loss = loss_fn(outputs, targets)
    jax.block_until_ready(loss)
    ref = _reference_loss(outputs, targets, flooding, smoothing, num_classes)
    assert jnp.allclose(loss, ref, atol=1e-5, rtol=1e-5), (loss, ref)

    # --- mixup (lamda) path ---
    lamda = jax.random.uniform(k3, (batch,), dtype=jnp.float32)
    indices = jax.random.permutation(k4, batch)
    loss_mix = loss_fn(outputs, targets, lamda=lamda, indices=indices)
    jax.block_until_ready(loss_mix)
    ref_mix = _reference_loss(outputs, targets, flooding, smoothing,
                              num_classes, lamda=lamda, indices=indices)
    assert jnp.allclose(loss_mix, ref_mix, atol=1e-5, rtol=1e-5), (loss_mix, ref_mix)

    # --- ragged batch (n % 8 != 0), plain one-hot: full-array single block ---
    batch2 = 12
    o2 = jax.random.normal(k3, (batch2, num_classes), dtype=jnp.float32)
    t2 = jax.random.randint(k4, (batch2,), 0, num_classes, dtype=jnp.int32)
    loss_fn2 = CrossEntropyLoss(0.0, 0.0, num_classes)
    loss2 = loss_fn2(o2, t2)
    jax.block_until_ready(loss2)
    ref2 = _reference_loss(o2, t2, 0.0, 0.0, num_classes)
    assert jnp.allclose(loss2, ref2, atol=1e-5, rtol=1e-5), (loss2, ref2)

    # --- forced small tile: multi-tile grid + partial edge block + row mask ---
    batch3 = 20
    o3 = jax.random.normal(k2, (batch3, num_classes), dtype=jnp.float32)
    t3 = jax.random.randint(k1, (batch3,), 0, num_classes, dtype=jnp.int32)
    loss_fn3 = CrossEntropyLoss(flooding, smoothing, num_classes,
                                max_block_rows=8)
    loss3 = loss_fn3(o3, t3)
    jax.block_until_ready(loss3)
    ref3 = _reference_loss(o3, t3, flooding, smoothing, num_classes)
    assert jnp.allclose(loss3, ref3, atol=1e-5, rtol=1e-5), (loss3, ref3)

    # --- bf16 logits: dtype-aware plan, in-kernel f32 upcast ---
    o4 = outputs.astype(jnp.bfloat16)
    loss4 = loss_fn(o4, targets)
    jax.block_until_ready(loss4)
    ref4 = _reference_loss(o4, targets, flooding, smoothing, num_classes)
    assert jnp.allclose(loss4, ref4, atol=2e-2, rtol=2e-2), (loss4, ref4)

    print("KERNEL_OK")
</pallas_src>

<mosaic_0001>
module attributes {stable_mosaic.version = 11 : i64} {
  func.func @_ce_int_kernel(%arg0: i32, %arg1: memref<8x32xf32, #tpu.memory_space<vmem>>, %arg2: memref<8x1xi32, #tpu.memory_space<vmem>>, %arg3: memref<8x128xf32, #tpu.memory_space<vmem>>) attributes {dimension_semantics = [#tpu.dimension_semantics<parallel>], iteration_bounds = array<i64: 1>, scalar_prefetch = 0 : i64, scratch_operands = 0 : i64, tpu.core_type = #tpu.core_type<tc>, window_params = [{transform_indices = @transform_0, window_bounds = array<i64: 8, 32>}, {transform_indices = @transform_1, window_bounds = array<i64: 8, 1>}, {transform_indices = @transform_2, window_bounds = array<i64: 8, 128>}]} {
    %c0 = arith.constant 0 : index
    %c0_0 = arith.constant 0 : index
    %0 = vector.load %arg1[%c0, %c0_0] : memref<8x32xf32, #tpu.memory_space<vmem>>, vector<8x32xf32>
    %cst = arith.constant dense<0xFF800000> : vector<8xf32>
    %1 = vector.multi_reduction <maximumf>, %0, %cst [1] : vector<8x32xf32> to vector<8xf32>
    %2 = vector.shape_cast %1 : vector<8xf32> to vector<8x1xf32>
    %3 = vector.broadcast %2 : vector<8x1xf32> to vector<8x32xf32>
    %4 = arith.subf %0, %3 : vector<8x32xf32>
    %5 = math.exp %4 : vector<8x32xf32>
    %cst_1 = arith.constant dense<0.000000e+00> : vector<8xf32>
    %6 = vector.multi_reduction <add>, %5, %cst_1 [1] : vector<8x32xf32> to vector<8xf32>
    %7 = vector.shape_cast %6 : vector<8xf32> to vector<8x1xf32>
    %8 = math.log %7 : vector<8x1xf32>
    %9 = tpu.iota {dimensions = array<i32: 1>} : vector<1x32xi32>
    %c0_2 = arith.constant 0 : index
    %c0_3 = arith.constant 0 : index
    %10 = vector.load %arg2[%c0_2, %c0_3] : memref<8x1xi32, #tpu.memory_space<vmem>>, vector<8x1xi32>
    %11 = vector.broadcast %9 : vector<1x32xi32> to vector<8x32xi32>
    %12 = vector.broadcast %10 : vector<8x1xi32> to vector<8x32xi32>
    %13 = arith.cmpi eq, %11, %12 : vector<8x32xi32>
    %cst_4 = arith.constant 0.000000e+00 : f32
    %14 = vector.broadcast %cst_4 : f32 to vector<8x32xf32>
    %15 = arith.select %13, %4, %14 : vector<8x32xi1>, vector<8x32xf32>
    %cst_5 = arith.constant dense<0.000000e+00> : vector<8xf32>
    %16 = vector.multi_reduction <add>, %15, %cst_5 [1] : vector<8x32xf32> to vector<8xf32>
    %17 = vector.shape_cast %16 : vector<8xf32> to vector<8x1xf32>
    %18 = arith.subf %17, %8 : vector<8x1xf32>
    %cst_6 = arith.constant dense<0.000000e+00> : vector<8xf32>
    %19 = vector.multi_reduction <add>, %4, %cst_6 [1] : vector<8x32xf32> to vector<8xf32>
    %20 = vector.shape_cast %19 : vector<8xf32> to vector<8x1xf32>
    %cst_7 = arith.constant 3.200000e+01 : f32
    %21 = vector.broadcast %cst_7 : f32 to vector<8x1xf32>
    %22 = arith.mulf %21, %8 : vector<8x1xf32>
    %23 = arith.subf %20, %22 : vector<8x1xf32>
    %cst_8 = arith.constant 0.0032258064 : f32
    %24 = vector.broadcast %cst_8 : f32 to vector<8x1xf32>
    %25 = arith.mulf %24, %23 : vector<8x1xf32>
    %cst_9 = arith.constant 0.896774172 : f32
    %26 = vector.broadcast %cst_9 : f32 to vector<8x1xf32>
    %27 = arith.mulf %26, %18 : vector<8x1xf32>
    %28 = arith.addf %25, %27 : vector<8x1xf32>
    %cst_10 = arith.constant 0.000000e+00 : f32
    %29 = vector.broadcast %cst_10 : f32 to vector<8x1xf32>
    %30 = arith.subf %29, %28 : vector<8x1xf32>
    %31 = vector.shape_cast %30 : vector<8x1xf32> to vector<1x8x1xf32>
    %cst_11 = arith.constant dense<0.000000e+00> : vector<1xf32>
    %32 = vector.multi_reduction <add>, %31, %cst_11 [1, 2] : vector<1x8x1xf32> to vector<1xf32>
    %33 = vector.shape_cast %32 : vector<1xf32> to vector<1x1x1xf32>
    %34 = vector.extract %33[0, 0, 0] : f32 from vector<1x1x1xf32>
    %35 = vector.broadcast %34 : f32 to vector<1x1xf32>
    %36 = tpu.iota {dimensions = array<i32: 0>} : vector<8x128xi32>
    %37 = tpu.iota {dimensions = array<i32: 1>} : vector<8x128xi32>
    %c0_i32 = arith.constant 0 : i32
    %38 = vector.broadcast %c0_i32 : i32 to vector<8x128xi32>
    %39 = arith.cmpi eq, %36, %38 : vector<8x128xi32>
    %c0_i32_12 = arith.constant 0 : i32
    %40 = vector.broadcast %c0_i32_12 : i32 to vector<8x128xi32>
    %41 = arith.cmpi eq, %37, %40 : vector<8x128xi32>
    %42 = arith.andi %39, %41 : vector<8x128xi1>
    %cst_13 = arith.constant 0.000000e+00 : f32
    %43 = vector.shape_cast %35 : vector<1x1xf32> to vector<1x1xf32>
    %44 = vector.broadcast %43 : vector<1x1xf32> to vector<8x128xf32>
    %45 = vector.broadcast %cst_13 : f32 to vector<8x128xf32>
    %46 = arith.select %42, %44, %45 : vector<8x128xi1>, vector<8x128xf32>
    %c0_14 = arith.constant 0 : index
    %c0_15 = arith.constant 0 : index
    %47 = vector.load %arg3[%c0_14, %c0_15] : memref<8x128xf32, #tpu.memory_space<vmem>>, vector<8x128xf32>
    tpu.vector_store %arg3[%c0_14, %c0_15], %46 {strides = array<i32>} : memref<8x128xf32, #tpu.memory_space<vmem>>, vector<8x128xf32>,
    return
  }
  func.func @transform_0(%arg0: i32) -> (i32, i32) {
    %c0_i32 = arith.constant 0 : i32
    %c0_i32_0 = arith.constant 0 : i32
    return %arg0, %c0_i32 : i32, i32
  }
  func.func @transform_1(%arg0: i32) -> (i32, i32) {
    %c0_i32 = arith.constant 0 : i32
    %c0_i32_0 = arith.constant 0 : i32
    return %arg0, %c0_i32 : i32, i32
  }
  func.func @transform_2(%arg0: i32) -> (i32, i32) {
    %c0_i32 = arith.constant 0 : i32
    %c0_i32_0 = arith.constant 0 : i32
    return %c0_i32, %arg0 : i32, i32
  }
}

</mosaic_0001>

<bundles_post_ra>
// kernel: tpu_custom_call.1
= control target key start
LH: loop header
LB: loop body
LE: loop exit
PB: predicated region body
PF: predicated region fallthrough
CT: control target
= control target key end

     0   :  { %vm13_vm0 = vcmask 261120   ;;  %s146_s0 = inlined_call_operand.vmem [shape: f32[8,32], index: 0, kind: input, shape index: {}]   ;;  %s147_s1 = inlined_call_operand.vmem [shape: s32[8,1], index: 1, kind: input, shape index: {}]   ;;  %s148_s2 = inlined_call_operand.hbm [shape: f32[8,128], index: 2, kind: output, shape index: {}]  }
   0x1   :  { %v12_v0 = vld [vmem:[%s146_s0] sm:$0xff] }
   0x2   :  { %7 = vsyncpa [#allocation3], 0  ;;  %v14_v1 = vsel %vm13_vm0, %v12_v0, -inf  ;;  %v116_v2 = vmov 0   ;;  %v27_v3 = vld [vmem:[%s147_s1] sm:$0xff]  ;;  %v25_v10 = vlaneseq  ;;  %vm46_vm2 = vcmask 7168  }
   0x3   :  { %85 = vset.pattern.permute.xlu0 %v116_v2  ;;  %s117_s0 = smov [#allocation2]   ;;  %s72_s15 = sshll.u32 %s148_s2, 4  ;;  %s73_s15 = int_to_ptr.hbm [resolvable:$true] %s72_s15 }
   0x4   :  { %15 = vmax.xlane.f32.xlu0 %v14_v1  ;;  %v26_v11 = vand.u32 127, %v25_v10  ;;  %v58_v35 = vshrl.u32 %v25_v10, 7  ;;  %s70_s1 = sshll.u32 %s117_s0, 4  ;;  %s71_s1 = int_to_ptr.vmem [resolvable:$true] %s70_s1 }
   0x6   :  { %vm59_vm3 = vcmp.eq.s32.totalorder %v58_v35, 0  ;;  %vm60_vm4 = vcmp.eq.s32.totalorder %v26_v11, 0 }
   0x7   :  { %vm61_vm5 = vmand %vm59_vm3, %vm60_vm4 }
  0x18   :  { %29 = vperm.xlu0 %85, %v27_v3  }
  0x77   :  { %v16_v4 = vpop.xlane.xlu0 %15 }
  0x78   :  { %v17_v5 = vsub.f32 %v12_v0, %v16_v4 }
  0x7a   :  { %v18_v6 = vmul.f32 1.442695, %v17_v5  ;;  %v37_v7 = vsel %vm13_vm0, %v17_v5, 0.0 }
  0x7b   :  { %38 = vadd.xlane.f32.xlu2 %v37_v7 }
  0x7c   :  { %86 = vpow2.f32 %v18_v6 }
  0x82   :  { %v87_v8 = vpop.eup %86 }
  0x83   :  { %v20_v9 = vsel %vm13_vm0, %v87_v8, 0.0 }
  0x84   :  { %21 = vadd.xlane.f32.xlu1 %v20_v9 }
  0x8a   :  { %v30_v12 = vpop.permute.xlu0 %29 }
  0x8b   :  { %vm31_vm1 = vcmp.eq.s32.totalorder %v26_v11, %v30_v12 }
  0x8c   :  { %v32_v13 = vsel %vm31_vm1, %v17_v5, 0.0 }
  0x8d   :  { %v33_v14 = vsel %vm13_vm0, %v32_v13, 0.0 }
  0x8e   :  { %34 = vadd.xlane.f32.xlu1 %v33_v14 }
  0xee   :  { %v39_v20 = vpop.xlane.xlu2 %38 }
  0xf7   :  { %v22_v15 = vpop.xlane.xlu1 %21 }
  0xf8   :  { %88 = vlog2.f32 %v22_v15 }
  0xfe   :  { %v89_v16 = vpop.eup %88 }
  0xff   :  { %v24_v17 = vmul.f32 0.6931472, %v89_v16 }
 0x101   :  { %v40_v18 = vmul.f32 32.0, %v24_v17  ;;  %v35_v19 = vpop.xlane.xlu1 %34 }
 0x102   :  { %v36_v21 = vsub.f32 %v35_v19, %v24_v17 }
 0x103   :  { %v41_v22 = vsub.f32 %v39_v20, %v40_v18 }
 0x104   :  { %v43_v23 = vmul.f32 0.8967742, %v36_v21 }
 0x105   :  { %v42_v24 = vmul.f32 0.0032258064, %v41_v22 }
 0x107   :  { %v44_v25 = vadd.f32 %v43_v23, %v42_v24 }
 0x109   :  { %v45_v26 = vsub.f32 0.0, %v44_v25 }
 0x10b   :  { %v47_v27 = vsel %vm46_vm2, %v45_v26, 0.0 }
 0x10c   :  { %48 = vadd.xlane.f32.xlu2 %v47_v27 }
 0x17f   :  { %v49_v28 = vpop.xlane.xlu2 %48 }
 0x180   :  { %v50_v29 = vrot.slane %v49_v28, 4 }
 0x182   :  { %v51_v30 = vadd.f32 %v50_v29, %v49_v28 }
 0x184   :  { %v52_v31 = vrot.slane %v51_v30, 2 }
 0x186   :  { %v53_v32 = vadd.f32 %v52_v31, %v51_v30 }
 0x188   :  { %v54_v33 = vrot.slane %v53_v32, 1 }
 0x18a   :  { %v55_v34 = vadd.f32 %v54_v33, %v53_v32 }
 0x18c   :  { %81 = vpush %v55_v34 }
 0x1bd   :  { %s82_s16 = spop %81 }
 0x1be   :  { %v62_v36 = vstv %s82_s16 }
 0x1bf   :  { %v63_v37 = vsel %vm61_vm5, %v62_v36, 0.0 }
 0x1c0   :  { %64 = vst [vmem:[#allocation2] sm:$0xff] %v63_v37 }
 0x1c1   :  { %75 = dma.vmem_to_hbm [thread:$0]  %s71_s1, 128, %s73_s15, [#allocation3]  }
 0x1c2   :  { %114 = dma.done.wait [#allocation3], 128  }
 0x1c3   :  { %115 = vsyncadd [#allocation3], 4294967168 }
 0x1c4   :  { %80 = vsyncpa [#allocation3], 1 }

</bundles_post_ra>
